<compile_context>
chip_gen: v7x
topology: tpu7x:2x2x1
jax: 0.10.0
libtpu: 0.0.40
codegen_flags: <defaults>
</compile_context>

<pallas_src>
import functools

import jax
import jax.numpy as jnp
from jax import lax
from jax.experimental import pallas as pl
from jax.experimental.pallas import tpu as pltpu

IN_F = 17
H1 = 20
H2 = 10
OUT_F = 3

# Largest batch tile (rows). VMEM cost per row (f32, lane/sublane padded, double
# buffered where pipelined) is ~1.3 KiB, dominated by the [TILE_B, 17] x block
# that lane-pads 17 -> 128.  16384 rows ~ 22 MiB; an explicit vmem_limit_bytes
# (computed below) keeps this legal on v5e/v6e/v7x.
MAX_TILE_B = 16384


def _round_up(n, m):
    return ((n + m - 1) // m) * m


def _mlp_kernel(x_ref, w1_ref, b1_ref, w2_ref, b2_ref, w3_ref, b3_ref, o_ref,
                *, approx_recip):
    # x: [TILE_B, IN_F]. All compute below keeps the batch on the 128-lane axis.
    x = x_ref[...]

    # fc1 + ReLU (dropout is identity in eval mode).
    # h1t[h, b] = sum_k w1[h, k] * x[b, k]        -> [H1, TILE_B]  (lane-dense)
    h1t = lax.dot_general(
        w1_ref[...], x, (((1,), (1,)), ((), ())),
        preferred_element_type=jnp.float32) + b1_ref[...]
    h1t = jnp.maximum(h1t, 0.0)

    # fc2 + ReLU (dropout is identity in eval mode).
    # h2t[h, b] = sum_k w2[h, k] * h1t[k, b]      -> [H2, TILE_B]
    h2t = lax.dot_general(
        w2_ref[...], h1t, (((1,), (0,)), ((), ())),
        preferred_element_type=jnp.float32) + b2_ref[...]
    h2t = jnp.maximum(h2t, 0.0)

    # fc3.  logits[o, b] = sum_k w3[o, k] * h2t[k, b]   -> [OUT_F, TILE_B]
    logits = lax.dot_general(
        w3_ref[...], h2t, (((1,), (0,)), ((), ())),
        preferred_element_type=jnp.float32) + b3_ref[...]

    # Softmax over the class axis (PyTorch dim=1 == axis 0 in this layout).
    m = jnp.max(logits, axis=0, keepdims=True)
    e = jnp.exp(logits - m)
    denom = jnp.sum(e, axis=0, keepdims=True)
    if approx_recip:
        probs = e * pl.reciprocal(denom, approx=True)  # EUP slot; ~1e-3 row-sum err
    else:
        probs = e / denom                              # exact; rows sum to 1
    o_ref[...] = probs.astype(o_ref.dtype)


def _vmem_limit_bytes(tile_b):
    """Scoped-VMEM budget sized from the actual (padded) buffers, with slack."""
    x_buf = 2 * tile_b * 128 * 4          # [tile_b,17] lane-pads to 128; 2 buffers
    out_buf = 2 * 8 * tile_b * 4          # [3,tile_b] sublane-pads to 8; 2 buffers
    tmp_buf = (24 + 16 + 3 * 8) * tile_b * 4   # h1t/h2t/softmax temps (padded)
    slack = 2 << 20                       # resident weight/bias blocks + compiler
    return max(int(1.5 * (x_buf + out_buf + tmp_buf)) + slack, 8 << 20)


@functools.partial(jax.jit, static_argnames=("tile_b", "approx_recip"))
def _forward_class_major(x, w1, b1, w2, b2, w3, b3, *, tile_b, approx_recip):
    b = x.shape[0]
    n_tiles = pl.cdiv(b, tile_b)          # ragged last block handled by Pallas
    kernel = functools.partial(_mlp_kernel, approx_recip=approx_recip)
    return pl.pallas_call(
        kernel,
        out_shape=jax.ShapeDtypeStruct((OUT_F, b), jnp.float32),
        grid=(n_tiles,),
        in_specs=[
            pl.BlockSpec((tile_b, IN_F), lambda i: (i, 0)),   # x slab
            pl.BlockSpec((H1, IN_F), lambda i: (0, 0)),       # w1 (PyTorch [out,in])
            pl.BlockSpec((H1, 1), lambda i: (0, 0)),          # b1
            pl.BlockSpec((H2, H1), lambda i: (0, 0)),         # w2
            pl.BlockSpec((H2, 1), lambda i: (0, 0)),          # b2
            pl.BlockSpec((OUT_F, H2), lambda i: (0, 0)),      # w3
            pl.BlockSpec((OUT_F, 1), lambda i: (0, 0)),       # b3
        ],
        out_specs=pl.BlockSpec((OUT_F, tile_b), lambda i: (0, i)),
        compiler_params=pltpu.CompilerParams(
            dimension_semantics=("parallel",),
            vmem_limit_bytes=_vmem_limit_bytes(tile_b),
        ),
    )(x, w1, b1, w2, b2, w3, b3)


def signal_predictor_forward(x, params, tile_b=None, approx_recip=False,
                             class_major_output=False):
    """x: [B, 17] float32. Returns softmax probabilities [B, 3] float32
    (or class-major [3, B] if class_major_output=True, saving one HBM pass)."""
    B = x.shape[0]
    if tile_b is None:
        b_ceil = _round_up(max(B, 1), 128)
        # Aim for >= 2 grid steps so v7x megacore can shard the batch axis.
        tile_b = min(MAX_TILE_B, max(128, _round_up(pl.cdiv(b_ceil, 2), 128)))
    out_t = _forward_class_major(
        x, params["w1"], params["b1"], params["w2"], params["b2"],
        params["w3"], params["b3"], tile_b=tile_b, approx_recip=approx_recip)
    if class_major_output:
        return out_t
    # [3, B] -> [B, 3]: tiny (~12 B/row) XLA transpose; use class_major_output=True
    # or fuse downstream to avoid it.
    return out_t.T


def init_params(key):
    """PyTorch nn.Linear default-style init, native PyTorch [out, in] layout."""
    ks = jax.random.split(key, 6)

    def unif(k, shape, fan_in):
        bound = 1.0 / (fan_in ** 0.5)
        return jax.random.uniform(k, shape, jnp.float32, -bound, bound)

    return {
        "w1": unif(ks[0], (H1, IN_F), IN_F),
        "b1": unif(ks[1], (H1, 1), IN_F),
        "w2": unif(ks[2], (H2, H1), H1),
        "b2": unif(ks[3], (H2, 1), H1),
        "w3": unif(ks[4], (OUT_F, H2), H2),
        "b3": unif(ks[5], (OUT_F, 1), H2),
    }


def ref_forward(x, params):
    """Pure-JAX reference (identical math to the PyTorch module in eval mode)."""
    h1 = jnp.maximum(x @ params["w1"].T + params["b1"].T, 0.0)
    h2 = jnp.maximum(h1 @ params["w2"].T + params["b2"].T, 0.0)
    logits = h2 @ params["w3"].T + params["b3"].T
    return jax.nn.softmax(logits, axis=1)


if __name__ == "__main__":
    key = jax.random.PRNGKey(0)
    k_x, k_p = jax.random.split(key)

    B = 300  # not a multiple of 128 -> exercises the ragged-last-block path
    x = jax.random.normal(k_x, (B, IN_F), dtype=jnp.float32)
    params = init_params(k_p)

    # Default path: tile_b=256 -> grid=(2,) (>=2 steps for v7x), ragged last block.
    out = jax.block_until_ready(signal_predictor_forward(x, params))
    # Explicit small tile: grid=(3,).
    out_128 = jax.block_until_ready(signal_predictor_forward(x, params, tile_b=128))
    # Approximate (EUP) reciprocal path, gated behind a flag.
    out_approx = jax.block_until_ready(
        signal_predictor_forward(x, params, approx_recip=True))

    ref = ref_forward(x, params)

    assert out.shape == (B, OUT_F)
    # Exact-divide softmax: rows must sum to 1 to f32 rounding.
    assert bool(jnp.max(jnp.abs(jnp.sum(out, axis=-1) - 1.0)) < 1e-5)
    assert bool(jnp.max(jnp.abs(jnp.sum(out_128, axis=-1) - 1.0)) < 1e-5)
    # Tightened comparison vs the pure-JAX reference (room only for MXU-vs-XLA
    # f32 matmul pass differences, not for e.g. bias-broadcast bugs).
    assert bool(jnp.max(jnp.abs(out - ref)) < 5e-3)
    assert bool(jnp.max(jnp.abs(out_128 - ref)) < 5e-3)
    # Approximate reciprocal path: row sums only ~1e-3 accurate.
    assert bool(jnp.max(jnp.abs(out_approx - ref)) < 1e-2)

    print("KERNEL_OK")
</pallas_src>

<mosaic_0001>
module attributes {stable_mosaic.version = 11 : i64} {
  func.func @_mlp_kernel(%arg0: i32, %arg1: memref<256x17xf32, #tpu.memory_space<vmem>>, %arg2: memref<20x17xf32, #tpu.memory_space<vmem>>, %arg3: memref<20x1xf32, #tpu.memory_space<vmem>>, %arg4: memref<10x20xf32, #tpu.memory_space<vmem>>, %arg5: memref<10x1xf32, #tpu.memory_space<vmem>>, %arg6: memref<3x10xf32, #tpu.memory_space<vmem>>, %arg7: memref<3x1xf32, #tpu.memory_space<vmem>>, %arg8: memref<3x256xf32, #tpu.memory_space<vmem>>) attributes {dimension_semantics = [#tpu.dimension_semantics<parallel>], iteration_bounds = array<i64: 2>, scalar_prefetch = 0 : i64, scratch_operands = 0 : i64, tpu.core_type = #tpu.core_type<tc>, window_params = [{transform_indices = @transform_0, window_bounds = array<i64: 256, 17>}, {pipeline_mode = #tpu.pipeline_mode<synchronous>, transform_indices = @transform_1, window_bounds = array<i64: 20, 17>}, {pipeline_mode = #tpu.pipeline_mode<synchronous>, transform_indices = @transform_2, window_bounds = array<i64: 20, 1>}, {pipeline_mode = #tpu.pipeline_mode<synchronous>, transform_indices = @transform_3, window_bounds = array<i64: 10, 20>}, {pipeline_mode = #tpu.pipeline_mode<synchronous>, transform_indices = @transform_4, window_bounds = array<i64: 10, 1>}, {pipeline_mode = #tpu.pipeline_mode<synchronous>, transform_indices = @transform_5, window_bounds = array<i64: 3, 10>}, {pipeline_mode = #tpu.pipeline_mode<synchronous>, transform_indices = @transform_6, window_bounds = array<i64: 3, 1>}, {transform_indices = @transform_7, window_bounds = array<i64: 3, 256>}]} {
    %c0 = arith.constant 0 : index
    %c0_0 = arith.constant 0 : index
    %0 = vector.load %arg1[%c0, %c0_0] : memref<256x17xf32, #tpu.memory_space<vmem>>, vector<256x17xf32>
    %c0_1 = arith.constant 0 : index
    %c0_2 = arith.constant 0 : index
    %1 = vector.load %arg2[%c0_1, %c0_2] : memref<20x17xf32, #tpu.memory_space<vmem>>, vector<20x17xf32>
    %cst = arith.constant dense<0.000000e+00> : vector<20x256xf32>
    %2 = tpu.matmul %1, %0, %cst {dimension_numbers = #tpu.dot_dimension_numbers<[1], [1], [0], [0], [0, 0, 1, 0], [], []>} : vector<20x17xf32>, vector<256x17xf32>, vector<20x256xf32> -> vector<20x256xf32>
    %c0_3 = arith.constant 0 : index
    %c0_4 = arith.constant 0 : index
    %3 = vector.load %arg3[%c0_3, %c0_4] : memref<20x1xf32, #tpu.memory_space<vmem>>, vector<20x1xf32>
    %4 = vector.broadcast %3 : vector<20x1xf32> to vector<20x256xf32>
    %5 = arith.addf %2, %4 : vector<20x256xf32>
    %cst_5 = arith.constant 0.000000e+00 : f32
    %6 = vector.broadcast %cst_5 : f32 to vector<20x256xf32>
    %7 = arith.maximumf %5, %6 : vector<20x256xf32>
    %c0_6 = arith.constant 0 : index
    %c0_7 = arith.constant 0 : index
    %8 = vector.load %arg4[%c0_6, %c0_7] : memref<10x20xf32, #tpu.memory_space<vmem>>, vector<10x20xf32>
    %cst_8 = arith.constant dense<0.000000e+00> : vector<10x256xf32>
    %9 = tpu.matmul %8, %7, %cst_8 {dimension_numbers = #tpu.dot_dimension_numbers<[1], [0], [0], [1], [0, 0, 1, 1], [], []>} : vector<10x20xf32>, vector<20x256xf32>, vector<10x256xf32> -> vector<10x256xf32>
    %c0_9 = arith.constant 0 : index
    %c0_10 = arith.constant 0 : index
    %10 = vector.load %arg5[%c0_9, %c0_10] : memref<10x1xf32, #tpu.memory_space<vmem>>, vector<10x1xf32>
    %11 = vector.broadcast %10 : vector<10x1xf32> to vector<10x256xf32>
    %12 = arith.addf %9, %11 : vector<10x256xf32>
    %cst_11 = arith.constant 0.000000e+00 : f32
    %13 = vector.broadcast %cst_11 : f32 to vector<10x256xf32>
    %14 = arith.maximumf %12, %13 : vector<10x256xf32>
    %c0_12 = arith.constant 0 : index
    %c0_13 = arith.constant 0 : index
    %15 = vector.load %arg6[%c0_12, %c0_13] : memref<3x10xf32, #tpu.memory_space<vmem>>, vector<3x10xf32>
    %cst_14 = arith.constant dense<0.000000e+00> : vector<3x256xf32>
    %16 = tpu.matmul %15, %14, %cst_14 {dimension_numbers = #tpu.dot_dimension_numbers<[1], [0], [0], [1], [0, 0, 1, 1], [], []>} : vector<3x10xf32>, vector<10x256xf32>, vector<3x256xf32> -> vector<3x256xf32>
    %c0_15 = arith.constant 0 : index
    %c0_16 = arith.constant 0 : index
    %17 = vector.load %arg7[%c0_15, %c0_16] : memref<3x1xf32, #tpu.memory_space<vmem>>, vector<3x1xf32>
    %18 = vector.broadcast %17 : vector<3x1xf32> to vector<3x256xf32>
    %19 = arith.addf %16, %18 : vector<3x256xf32>
    %cst_17 = arith.constant dense<0xFF800000> : vector<256xf32>
    %20 = vector.multi_reduction <maximumf>, %19, %cst_17 [0] : vector<3x256xf32> to vector<256xf32>
    %21 = vector.shape_cast %20 : vector<256xf32> to vector<1x256xf32>
    %22 = vector.broadcast %21 : vector<1x256xf32> to vector<3x256xf32>
    %23 = arith.subf %19, %22 : vector<3x256xf32>
    %24 = math.exp %23 : vector<3x256xf32>
    %cst_18 = arith.constant dense<0.000000e+00> : vector<256xf32>
    %25 = vector.multi_reduction <add>, %24, %cst_18 [0] : vector<3x256xf32> to vector<256xf32>
    %26 = vector.shape_cast %25 : vector<256xf32> to vector<1x256xf32>
    %27 = vector.broadcast %26 : vector<1x256xf32> to vector<3x256xf32>
    %28 = arith.divf %24, %27 : vector<3x256xf32>
    %c0_19 = arith.constant 0 : index
    %c0_20 = arith.constant 0 : index
    %29 = vector.load %arg8[%c0_19, %c0_20] : memref<3x256xf32, #tpu.memory_space<vmem>>, vector<3x256xf32>
    tpu.vector_store %arg8[%c0_19, %c0_20], %28 {strides = array<i32>} : memref<3x256xf32, #tpu.memory_space<vmem>>, vector<3x256xf32>,
    return
  }
  func.func @transform_0(%arg0: i32) -> (i32, i32) {
    %c0_i32 = arith.constant 0 : i32
    %c0_i32_0 = arith.constant 0 : i32
    return %arg0, %c0_i32 : i32, i32
  }
  func.func @transform_1(%arg0: i32) -> (i32, i32) {
    %c0_i32 = arith.constant 0 : i32
    %c0_i32_0 = arith.constant 0 : i32
    %c0_i32_1 = arith.constant 0 : i32
    return %c0_i32, %c0_i32_0 : i32, i32
  }
  func.func @transform_2(%arg0: i32) -> (i32, i32) {
    %c0_i32 = arith.constant 0 : i32
    %c0_i32_0 = arith.constant 0 : i32
    %c0_i32_1 = arith.constant 0 : i32
    return %c0_i32, %c0_i32_0 : i32, i32
  }
  func.func @transform_3(%arg0: i32) -> (i32, i32) {
    %c0_i32 = arith.constant 0 : i32
    %c0_i32_0 = arith.constant 0 : i32
    %c0_i32_1 = arith.constant 0 : i32
    return %c0_i32, %c0_i32_0 : i32, i32
  }
  func.func @transform_4(%arg0: i32) -> (i32, i32) {
    %c0_i32 = arith.constant 0 : i32
    %c0_i32_0 = arith.constant 0 : i32
    %c0_i32_1 = arith.constant 0 : i32
    return %c0_i32, %c0_i32_0 : i32, i32
  }
  func.func @transform_5(%arg0: i32) -> (i32, i32) {
    %c0_i32 = arith.constant 0 : i32
    %c0_i32_0 = arith.constant 0 : i32
    %c0_i32_1 = arith.constant 0 : i32
    return %c0_i32, %c0_i32_0 : i32, i32
  }
  func.func @transform_6(%arg0: i32) -> (i32, i32) {
    %c0_i32 = arith.constant 0 : i32
    %c0_i32_0 = arith.constant 0 : i32
    %c0_i32_1 = arith.constant 0 : i32
    return %c0_i32, %c0_i32_0 : i32, i32
  }
  func.func @transform_7(%arg0: i32) -> (i32, i32) {
    %c0_i32 = arith.constant 0 : i32
    %c0_i32_0 = arith.constant 0 : i32
    return %c0_i32, %arg0 : i32, i32
  }
}

</mosaic_0001>

<bundles_post_ra>
// kernel: _forward_class_major.1
= control target key start
LH: loop header
LB: loop body
LE: loop exit
PB: predicated region body
PF: predicated region fallthrough
CT: control target
= control target key end

     0   :  { %12 = vsyncpa [#allocation3], 0  ;;  %s1421_s0 = inlined_call_operand.vmem [shape: f32[300,17], index: 0, kind: input, shape index: {}]   ;;  %s1422_s1 = inlined_call_operand.vmem [shape: f32[20,17], index: 1, kind: input, shape index: {}]   ;;  %s1423_s2 = inlined_call_operand.vmem [shape: f32[20,1], index: 2, kind: input, shape index: {}]   ;;  %s1424_s3 = inlined_call_operand.vmem [shape: f32[10,20], index: 3, kind: input, shape index: {}]   ;;  %s1425_s4 = inlined_call_operand.vmem [shape: f32[10,1], index: 4, kind: input, shape index: {}]   ;;  %s1426_s5 = inlined_call_operand.vmem [shape: f32[3,10], index: 5, kind: input, shape index: {}]   ;;  %s1427_s6 = inlined_call_operand.vmem [shape: f32[3,1], index: 6, kind: input, shape index: {}]   ;;  %s1428_s7 = inlined_call_operand.hbm [shape: f32[3,300], index: 7, kind: output, shape index: {}]  }
   0x1   :  { %14 = vsyncpa [#allocation3 + $0x1], 0  ;;  %s1188_s24 = smov 0   ;;  %s1190_s25 = smov 0  }
   0x2   :  { %s1192_s26 = smov 0   ;;  %s1194_s27 = smov 0  }
   0x3 LB: > { %s1209_s28 = sadd.s32 4294967295, %s1142_s27   ;;  %s874_s29 = sadd.s32 4294967294, %s1142_s27   ;;  %s1142_s27 = sphi %s1194_s27, %s1436_s27   ;;  %s1138_s26 = sphi %s1192_s26, %s1435_s26   ;;  %s1134_s25 = sphi %s1190_s25, %s1434_s25   ;;  %s1130_s24 = sphi %s1188_s24, %s1433_s24  }
   0x4   : > { %s1213_s30 = sadd.s32 1, %s1142_s27   ;;  %s179_s8 = sadd.s32 1, %s1138_s26 }
   0x5   : > { %s176_s9 = ssub.s32 %s1142_s27, %s1213_s30  ;;  %p189_p0 = scmp.ne.s32.totalorder %s1138_s26, %s1134_s25 }
   0x6   : > { %p177_p1 = scmp.eq.s32.totalorder %s176_s9, 0  ;;  %p190_p2 = scmp.eq.s32.totalorder %s1209_s28, 1 }
   0x7   : > { %p195_p3 = scmp.ne.s32.totalorder %s1134_s25, %s1130_s24  ;;  %p196_p4 = scmp.eq.s32.totalorder %s874_s29, 1 }
   0x8   : > { %s1224_s10 = scalar_select %p177_p1, %s1138_s26, %s179_s8  }
   0x9   : > { %p1226_p5 = por %p190_p2, %p189_p0  ;;  %p1230_p6 = por %p196_p4, %p195_p3 }
   0xa   : > { %p877_p7 = scmp.ge.s32.totalorder %s1142_s27, 1  ;;  %p249_p8 = scmp.lt.s32.totalorder %s1142_s27, 3 }
   0xc   : > { %p250_p9 = pnand %p877_p7, %p249_p8 }
   0xd   : > { %s879_s13 = sshll.u32 (!%p250_p9), %s1209_s28, 5  ;;  %vm357_vm0 = vcmask (!%p250_p9), 138240   ;;  %v1240_v0 = vld [vmem:[%s1422_s1] sm:$0xff] (!%p250_p9)  ;;  %v1144_v2 = vmov (!%p250_p9), 0   ;;  %v341_v3 = vld [vmem:[%s1423_s2 + $0x10] sm:$0xf] (!%p250_p9) }
   0xe   : > { %253 = sbr.rel (%p250_p9) target bundleno = 846 (0x34e), region = 48  ;;  %p290_p10 = scmp.lt.s32.totalorder (!%p250_p9), %s879_s13, 37  ;;  %965 = vmatprep.mubr.msk.f32.mxu0 (!%p250_p9), %vm357_vm0, %v1240_v0  ;;  %v339_v1 = vld [vmem:[%s1423_s2] sm:$0xff] (!%p250_p9)  ;;  %1070 = vset.pattern.permute.xlu0 (!%p250_p9), %v1144_v2  ;;  %v340_v4 = vld [vmem:[%s1423_s2 + $0x8] sm:$0xff] (!%p250_p9)  ;;  %vm1263_vm1 = vmpackc.low (!%p250_p9), %vm357_vm0, %vm357_vm0  ;;  %v1145_v59 = vmov (!%p250_p9), 0.0   ;;  %vm573_vm2 = vcmask (!%p250_p9), 1043456  }
   0xf   : > { %1071 = vset.pattern.permute.xlu1 (!%p250_p9), %v1144_v2  ;;  %344 = vperm.xlu0 (!%p250_p9), %1070, %v339_v1   ;;  %v554_v5 = vld [vmem:[%s1425_s4] sm:$0xff] (!%p250_p9)  ;;  %v555_v7 = vld [vmem:[%s1425_s4 + $0x8] sm:$0x3] (!%p250_p9)  ;;  %v338_v58 = vld [vmem:[%s1422_s1 + $0x10] sm:$0xf] (!%p250_p9)  ;;  %vm566_vm3 = vcmask (!%p250_p9), 162816  }
  0x10   : > { %354 = vperm.xlu1 (!%p250_p9), %1071, %v341_v3   ;;  %v662_v17 = vld [vmem:[%s1427_s6] sm:$0x7] (!%p250_p9)  ;;  %v337_v57 = vld [vmem:[%s1422_s1 + $0x8] sm:$0xff] (!%p250_p9)  ;;  %644 = vmatprep.mubr.f32.mxu1 (!%p250_p9), %v1145_v59  ;;  %vm672_vm4 = vcmask (!%p250_p9), 1041408   ;;  %vm1146_vm5 = vmmov (!%p250_p9), 1   ;;  %vm668_vm7 = vcmask (!%p250_p9), 80896  }
  0x11   : > { %vm1024_vm6 = vmpackc.low (!%p250_p9), %vm672_vm4, %vm1146_vm5  ;;  %s282_s15 = sand.u32 (!%p250_p9), 1, %s1134_s25   ;;  %vm750_vm8 = vcmask (!%p250_p9), 1042432  }
  0x12   : > { %s878_s16 = sshll.u32 (!%p250_p9), %s282_s15, 3  ;;  %s1367_s17 = scalar_lea.sflag (!%p250_p9), [#allocation3], %s282_s15 }
  0x13   : > { %349 = vperm.xlu0 (!%p250_p9), %1070, %v340_v4  }
  0x14   : > { %558 = vperm.xlu1 (!%p250_p9), %1071, %v554_v5  }
  0x15   : > { %s1438_s13 = smov (!%p290_p10, %s879_s13), 37  ;;  %s924_s18 = sshll.u32 (%p1226_p5), %s1209_s28, 1 }
  0x16   : > { %s880_s29 = sshll.u32 %s1438_s13, 3  ;;  %s284_s13 = scalar_lea.vmem [#allocation2], %s878_s16 }
  0x17   : > { %s1259_s14 = scalar_lea.vmem %s1421_s0, %s880_s29  ;;  %563 = vperm.xlu0 %1070, %v555_v7   ;;  %s803_s19 = ssub.s32 (%p1226_p5), 3, %s924_s18 }
  0x18   : > { %v320_v8 = vld [vmem:[%s1259_s14 + $0x80] sm:$0xff]  ;;  %v321_v9 = vld [vmem:[%s1259_s14 + $0x88] sm:$0xff]  ;;  %v322_v13 = vld [vmem:[%s1259_s14 + $0x90] sm:$0xff]  ;;  %665 = vperm.xlu1 %1071, %v662_v17   ;;  %p804_p11 = scmp.lt.s32.totalorder (%p1226_p5), %s803_s19, 2 }
  0x19   : > { %v304_v10 = vld [vmem:[%s1259_s14] sm:$0xff]  ;;  %v971_v11 = vpack.c.bf16 %v321_v9, %v320_v8  ;;  %v305_v12 = vld [vmem:[%s1259_s14 + $0x8] sm:$0xff]  ;;  %v323_v14 = vld [vmem:[%s1259_s14 + $0x98] sm:$0xff] }
  0x1a   : > { %v974_v15 = vpack.c.bf16 %v305_v12, %v304_v10  ;;  %v977_v16 = vpack.c.bf16 %v323_v14, %v322_v13  ;;  %v306_v18 = vld [vmem:[%s1259_s14 + $0x10] sm:$0xff]  ;;  %v307_v19 = vld [vmem:[%s1259_s14 + $0x18] sm:$0xff]  ;;  %v324_v20 = vld [vmem:[%s1259_s14 + $0xa0] sm:$0xff] }
  0x1b   : > { %973 = vmatprep.subr.msk.bf16.mxu0 %vm1263_vm1, %v971_v11  ;;  %v325_v21 = vld [vmem:[%s1259_s14 + $0xa8] sm:$0xff]  ;;  %v980_v22 = vpack.c.bf16 %v307_v19, %v306_v18  ;;  %v308_v24 = vld [vmem:[%s1259_s14 + $0x20] sm:$0xff]  ;;  %v326_v26 = vld [vmem:[%s1259_s14 + $0xb0] sm:$0xff] }
  0x1c   : > { %976 = vmatpush3.bf16.xpose.msk.msra.mxu0 %vm1263_vm1, %v974_v15  ;;  %v983_v23 = vpack.c.bf16 %v325_v21, %v324_v20  ;;  %v309_v25 = vld [vmem:[%s1259_s14 + $0x28] sm:$0xff]  ;;  %v327_v27 = vld [vmem:[%s1259_s14 + $0xb8] sm:$0xff]  ;;  %v310_v30 = vld [vmem:[%s1259_s14 + $0x30] sm:$0xff] }
  0x1d   : > { %979 = vmatprep.subr.msk.bf16.mxu0 %vm1263_vm1, %v977_v16  ;;  %v986_v28 = vpack.c.bf16 %v309_v25, %v308_v24  ;;  %v989_v29 = vpack.c.bf16 %v327_v27, %v326_v26  ;;  %v311_v31 = vld [vmem:[%s1259_s14 + $0x38] sm:$0xff]  ;;  %v328_v32 = vld [vmem:[%s1259_s14 + $0xc0] sm:$0xff]  ;;  %v329_v33 = vld [vmem:[%s1259_s14 + $0xc8] sm:$0xff] }
  0x1e   : > { %v992_v34 = vpack.c.bf16 %v311_v31, %v310_v30  ;;  %v995_v35 = vpack.c.bf16 %v329_v33, %v328_v32  ;;  %v312_v36 = vld [vmem:[%s1259_s14 + $0x40] sm:$0xff]  ;;  %v313_v37 = vld [vmem:[%s1259_s14 + $0x48] sm:$0xff]  ;;  %v330_v38 = vld [vmem:[%s1259_s14 + $0xd0] sm:$0xff] }
  0x1f   : > { %v331_v39 = vld [vmem:[%s1259_s14 + $0xd8] sm:$0xff]  ;;  %v998_v40 = vpack.c.bf16 %v313_v37, %v312_v36  ;;  %v314_v42 = vld [vmem:[%s1259_s14 + $0x50] sm:$0xff]  ;;  %v332_v44 = vld [vmem:[%s1259_s14 + $0xe0] sm:$0xff] }
  0x20   : > { %v1001_v41 = vpack.c.bf16 %v331_v39, %v330_v38  ;;  %v315_v43 = vld [vmem:[%s1259_s14 + $0x58] sm:$0xff]  ;;  %v333_v45 = vld [vmem:[%s1259_s14 + $0xe8] sm:$0xff]  ;;  %v316_v48 = vld [vmem:[%s1259_s14 + $0x60] sm:$0xff] }
  0x21   : > { %v1004_v46 = vpack.c.bf16 %v315_v43, %v314_v42  ;;  %v1007_v47 = vpack.c.bf16 %v333_v45, %v332_v44  ;;  %v317_v49 = vld [vmem:[%s1259_s14 + $0x68] sm:$0xff]  ;;  %v334_v50 = vld [vmem:[%s1259_s14 + $0xf0] sm:$0xff]  ;;  %v335_v51 = vld [vmem:[%s1259_s14 + $0xf8] sm:$0xff] }
  0x22   : > { %v1010_v52 = vpack.c.bf16 %v317_v49, %v316_v48  ;;  %v1013_v53 = vpack.c.bf16 %v335_v51, %v334_v50  ;;  %v318_v54 = vld [vmem:[%s1259_s14 + $0x70] sm:$0xff]  ;;  %v319_v55 = vld [vmem:[%s1259_s14 + $0x78] sm:$0xff]  ;;  %v552_v19 = vld [vmem:[%s1424_s3] sm:$0xff] }
  0x23   : > { %v1016_v56 = vpack.c.bf16 %v319_v55, %v318_v54  ;;  %v553_v20 = vld [vmem:[%s1424_s3 + $0x8] sm:$0x3]  ;;  %v661_v37 = vld [vmem:[%s1426_s5] sm:$0x7] }
  0x24   : > { %982 = vmatpush3.bf16.xpose.msk.msra.mxu0 %vm1263_vm1, %v980_v22 }
  0x25   : > { %985 = vmatprep.subr.msk.bf16.mxu0 %vm1263_vm1, %v983_v23 }
  0x2c   : > { %988 = vmatpush3.bf16.xpose.msk.msra.mxu0 %vm1263_vm1, %v986_v28 }
  0x2d   : > { %991 = vmatprep.subr.msk.bf16.mxu0 %vm1263_vm1, %v989_v29 }
  0x34   : > { %994 = vmatpush3.bf16.xpose.msk.msra.mxu0 %vm1263_vm1, %v992_v34 }
  0x35   : > { %997 = vmatprep.subr.msk.bf16.mxu0 %vm1263_vm1, %v995_v35 }
  0x3c   : > { %1000 = vmatpush3.bf16.xpose.msk.msra.mxu0 %vm1263_vm1, %v998_v40 }
  0x3d   : > { %1003 = vmatprep.subr.msk.bf16.mxu0 %vm1263_vm1, %v1001_v41 }
  0x44   : > { %1006 = vmatpush3.bf16.xpose.msk.msra.mxu0 %vm1263_vm1, %v1004_v46 }
  0x45   : > { %1009 = vmatprep.subr.msk.bf16.mxu0 %vm1263_vm1, %v1007_v47 }
  0x4c   : > { %1012 = vmatpush3.bf16.xpose.msk.msra.mxu0 %vm1263_vm1, %v1010_v52 }
  0x4d   : > { %1015 = vmatprep.subr.msk.bf16.mxu0 %vm1263_vm1, %v1013_v53 }
  0x54   : > { %1018 = vmatpush3.bf16.xpose.msk.msra.mxu0 %vm1263_vm1, %v1016_v56 }
  0x5b   : > { %966 = vmatmul.mubr.msk.f32.vlgmr.msra.gmra.mrb[0].mxu0 %vm357_vm0, %v1240_v0 }
  0x5c   : > { %967 = vmatprep.mubr.msk.f32.mxu0 %vm357_vm0, %v337_v57 }
  0x5f   : > { %968 = vmatmul.mubr.msk.f32.gmra.mrb[2].mxu0 %vm357_vm0, %v337_v57 }
  0x60   : > { %969 = vmatprep.mubr.msk.f32.mxu0 %vm357_vm0, %v338_v58 }
  0x63   : > { %970 = vmatmul.mubr.msk.f32.gmra.mrb[4].mxu0 %vm357_vm0, %v338_v58 }
  0x8e   : > { %v345_v60 = vpop.permute.xlu0 %344 }
  0x8f   : > { %v355_v11 = vpop.permute.xlu1 %354 }
  0x92   : > { %v350_v1 = vpop.permute.xlu0 %349 }
  0x93   : > { %v559_v23 = vpop.permute.xlu1 %558 }
  0x96   : > { %v564_v25 = vpop.permute.xlu0 %563 }
  0x97   : > { %v666_v38 = vpop.permute.xlu1 %665 }
 0x12e   : > { %v529_v61 = vpop.f32.mrb[0].mxu0 }
 0x12f   : > { %v531_v62 = vpop.f32.mrb[1].mxu0  ;;  %v530_v63 = vadd.f32 %v529_v61, %v345_v60 }
 0x130   : > { %v532_v0 = vadd.f32 %v531_v62, %v345_v60 }
 0x131   : > { %v546_v6 = vmax.f32 %v530_v63, 0.0 }
 0x132   : > { %v535_v2 = vpop.f32.mrb[2].mxu0  ;;  %v547_v8 = vmax.f32 %v532_v0, 0.0 }
 0x133   : > { %v536_v3 = vadd.f32 %v535_v2, %v350_v1  ;;  %v537_v4 = vpop.f32.mrb[3].mxu0 }
 0x134   : > { %v538_v5 = vadd.f32 %v537_v4, %v350_v1 }
 0x135   : > { %v548_v7 = vmax.f32 %v536_v3, 0.0 }
 0x136   : > { %v549_v9 = vmax.f32 %v538_v5, 0.0  ;;  %v541_v10 = vpop.f32.mrb[4].mxu0 }
 0x137   : > { %v543_v12 = vpop.f32.mrb[5].mxu0  ;;  %v1021_v13 = vpack.c.bf16 %v548_v7, %v546_v6  ;;  %v542_v16 = vadd.f32 %v541_v10, %v355_v11 }
 0x138   : > { %v544_v14 = vadd.f32 %v543_v12, %v355_v11  ;;  %v1019_v15 = vpack.c.bf16 %v549_v9, %v547_v8 }
 0x139   : > { %v550_v18 = vmax.f32 %v542_v16, 0.0 }
 0x13a   : > { %v551_v17 = vmax.f32 %v544_v14, 0.0  ;;  %1020 = vmatprep.subr.bf16.mxu1 %v1019_v15 }
 0x13b   : > { %1022 = vmatpush1.bf16.msra.mxu1 %v1021_v13 }
 0x13c   : > { %916 = vmatprep.subr.msk.mxu1 %vm573_vm2, %v551_v17 }
 0x13f   : > { %917 = vmatpush1.msk.msra.mxu1 %vm573_vm2, %v550_v18 }
 0x140   : > { %918 = vmatmul.mubr.msk.f32.vlgmr.msra.gmra.mrb[0].mxu1 %vm566_vm3, %v552_v19 }
 0x141   : > { %650 = vmatprep.mubr.f32.mxu1 %v1145_v59 }
 0x144   : > { %919 = vmatmul.mubr.msk.f32.gmra.mrb[2].mxu1 %vm566_vm3, %v553_v20 }
 0x145   : > { %743 = vmatprep.mubr.f32.mxu1 %v1145_v59 }
 0x213   : > { %v646_v21 = vpop.f32.mrb[0].mxu1 }
 0x214   : > { %v648_v22 = vpop.f32.mrb[1].mxu1  ;;  %v647_v24 = vadd.f32 %v646_v21, %v559_v23 }
 0x215   : > { %v649_v26 = vadd.f32 %v648_v22, %v559_v23 }
 0x216   : > { %v657_v31 = vmax.f32 %v647_v24, 0.0 }
 0x217   : > { %v652_v27 = vpop.f32.mrb[2].mxu1  ;;  %v658_v33 = vmax.f32 %v649_v26, 0.0 }
 0x218   : > { %v653_v28 = vadd.f32 %v652_v27, %v564_v25  ;;  %v654_v29 = vpop.f32.mrb[3].mxu1 }
 0x219   : > { %v655_v30 = vadd.f32 %v654_v29, %v564_v25 }
 0x21a   : > { %v659_v32 = vmax.f32 %v653_v28, 0.0 }
 0x21b   : > { %v660_v34 = vmax.f32 %v655_v30, 0.0 }
 0x21c   : > { %v1026_v35 = vpack.c.bf16 %v659_v32, %v657_v31 }
 0x21d   : > { %v1023_v36 = vpack.c.bf16 %v660_v34, %v658_v33 }
 0x21f   : > { %1025 = vmatprep.subr.msk.bf16.mxu1 %vm1024_vm6, %v1023_v36 }
 0x220   : > { %1028 = vmatpush1.bf16.msk.msra.mxu1 %vm1024_vm6, %v1026_v35 }
 0x223   : > { %922 = vmatmul.mubr.msk.f32.vlgmr.msra.gmra.mrb[4].mxu1 %vm668_vm7, %v661_v37 }
 0x2f6   : > { %v745_v39 = vpop.f32.mrb[4].mxu1 }
 0x2f7   : > { %v746_v40 = vadd.f32 %v745_v39, %v666_v38  ;;  %v747_v41 = vpop.f32.mrb[5].mxu1 }
 0x2f8   : > { %v748_v42 = vadd.f32 %v747_v41, %v666_v38 }
 0x2f9   : > { %v751_v43 = vsel %vm750_vm8, %v746_v40, -inf }
 0x2fa   : > { %v752_v44 = vrot.slane %v751_v43, 4  ;;  %v758_v45 = vsel %vm750_vm8, %v748_v42, -inf }
 0x2fb   : > { %v759_v46 = vrot.slane %v758_v45, 4 }
 0x2fc   : > { %v753_v47 = vmax.f32 %v751_v43, %v752_v44 }
 0x2fd   : > { %v760_v48 = vmax.f32 %v758_v45, %v759_v46 }
 0x2fe   : > { %v754_v49 = vrot.slane %v753_v47, 2 }
 0x2ff   : > { %v761_v50 = vrot.slane %v760_v48, 2 }
 0x300   : > { %v755_v51 = vmax.f32 %v753_v47, %v754_v49 }
 0x301   : > { %v762_v52 = vmax.f32 %v760_v48, %v761_v50 }
 0x302   : > { %v756_v53 = vrot.slane %v755_v51, 1 }
 0x303   : > { %v763_v54 = vrot.slane %v762_v52, 1 }
 0x304   : > { %v757_v55 = vmax.f32 %v755_v51, %v756_v53 }
 0x305   : > { %v764_v56 = vmax.f32 %v762_v52, %v763_v54 }
 0x306   : > { %v765_v57 = vsub.f32 %v746_v40, %v757_v55 }
 0x307   : > { %v766_v58 = vsub.f32 %v748_v42, %v764_v56 }
 0x308   : > { %v767_v59 = vmul.f32 1.442695, %v765_v57 }
 0x309   : > { %v769_v60 = vmul.f32 1.442695, %v766_v58 }
 0x30a   : > { %1072 = vpow2.f32 %v767_v59 }
 0x30b   : > { %1074 = vpow2.f32 %v769_v60 }
 0x314   : > { %v1073_v61 = vpop.eup %1072 }
 0x315   : > { %v1075_v62 = vpop.eup %1074  ;;  %v771_v63 = vsel %vm750_vm8, %v1073_v61, 0.0 }
 0x316   : > { %v772_v1 = vrot.slane %v771_v63, 4  ;;  %v778_v0 = vsel %vm750_vm8, %v1075_v62, 0.0 }
 0x317   : > { %v779_v2 = vrot.slane %v778_v0, 4 }
 0x318   : > { %v773_v3 = vadd.f32 %v772_v1, %v771_v63 }
 0x319   : > { %v780_v4 = vadd.f32 %v779_v2, %v778_v0 }
 0x31a   : > { %v774_v5 = vrot.slane %v773_v3, 2 }
 0x31b   : > { %v781_v6 = vrot.slane %v780_v4, 2 }
 0x31c   : > { %v775_v7 = vadd.f32 %v774_v5, %v773_v3 }
 0x31d   : > { %v782_v8 = vadd.f32 %v781_v6, %v780_v4 }
 0x31e   : > { %v776_v9 = vrot.slane %v775_v7, 1 }
 0x31f   : > { %v783_v10 = vrot.slane %v782_v8, 1 }
 0x320   : > { %v777_v11 = vadd.f32 %v776_v9, %v775_v7 }
 0x321   : > { %v784_v12 = vadd.f32 %v783_v10, %v782_v8 }
 0x322   : > { %1076 = vrcp.f32 %v777_v11 }
 0x323   : > { %1078 = vrcp.f32 %v784_v12 }
 0x32c   : > { %v1077_v13 = vpop.eup %1076  ;;  %801 = sbr.rel (!%p1226_p5) target bundleno = 846 (0x34e), region = 52 }
 0x32d   : > { %v1079_v14 = vpop.eup %1078  ;;  %v786_v15 = vmul.f32 %v1077_v13, %v1073_v61 }
 0x32e   : > { %v788_v16 = vmul.f32 %v1079_v14, %v1075_v62 }
 0x330   : > { %v791_v17 = vcombine.low %v786_v15, %v788_v16 }
 0x332   : > { %793 = vst [vmem:[%s284_s13] sm:$0x77] %v791_v17 }
 0x333   : > { %s1440_s19 = smov (!%p804_p11, %s803_s19), 2 }
 0x334   : > { %s1372_s20 = sshll.u32 %s1440_s19, 6 }
 0x335   : > { %s808_s21 = ssub.s32 128, %s1372_s20 }
 0x336   : > { %809 = vsyncadd %s1367_s17, %s808_s21  ;;  %p926_p12 = scmp.ne.s32.totalorder %s1372_s20, 0  ;;  %s932_s22 = sshll.u32 %s1209_s28, 7 }
 0x337   : > { %s1381_s29 = scalar_lea.hbm %s1428_s7, %s932_s22  ;;  %s815_s8 = sshll.u32 %s284_s13, 4  ;;  %s816_s8 = int_to_ptr.vmem [resolvable:$true] %s815_s8 }
 0x338   : > { %s1080_s9 = scalar_lea.vmem %s816_s8, %s1372_s20  ;;  %s1147_s14 = smov [#allocation2]  }
 0x339   : > { %p1081_p13 = scmp.ne.s32.totalorder %s816_s8, %s1080_s9  ;;  %s1084_s15 = sshll.u32 %s1147_s14, 4  ;;  %s1085_s15 = int_to_ptr.vmem [resolvable:$false] %s1084_s15 }
 0x33a   : > { %s1086_s16 = scalar_lea.vmem %s1085_s15, 256  ;;  %p1087_p2 = scmp.lt.s32.totalorder %s816_s8, %s1085_s15 }
 0x33b   : > { %p1082_p0 = pnand %p1081_p13, %p926_p12  ;;  %p1088_p3 = scmp.lt.s32.totalorder %s1086_s16, %s1080_s9 }
 0x33d   : > { %p1083_p1 = pneg %p1082_p0  ;;  %p1089_p4 = por %p1088_p3, %p1087_p2 }
 0x33f   : > { %p1090_p5 = pnand %p1089_p4, %p1083_p1 }
 0x341   : > { %1093 = shalt.err (!%p1090_p5)
}
 0x342   : > { %s1094_s28 = scalar_lea.hbm %s1381_s29, %s1372_s20  ;;  %s1098_s19 = scalar_lea.hbm %s1428_s7, 192 }
 0x343   : > { %p1095_p7 = scmp.ne.s32.totalorder %s1381_s29, %s1094_s28  ;;  %p1099_p10 = scmp.lt.u32.totalorder %s1381_s29, %s1428_s7 }
 0x344   : > { %p1100_p11 = scmp.lt.u32.totalorder %s1098_s19, %s1094_s28  ;;  %p1102_p0 = scmp.lt.u32.totalorder %s1094_s28, %s1381_s29 }
 0x345   : > { %p1096_p8 = pnand %p1095_p7, %p926_p12 }
 0x346   : > { %p1101_p13 = por %p1100_p11, %p1099_p10 }
 0x347   : > { %p1097_p9 = pneg %p1096_p8 }
 0x348   : > { %p1103_p1 = por %p1102_p0, %p1101_p13 }
 0x34a   : > { %p1104_p2 = pnand %p1103_p1, %p1097_p9 }
 0x34c   : > { %1107 = shalt.err (!%p1104_p2)
}
 0x34d   : > { %818 = dma.vmem_to_hbm [thread:$0]  (%p926_p12), %s816_s8, %s1372_s20, %s1381_s29, %s1367_s17  }
 0x34e PF: > { %p1034_p3 = scmp.ge.s32.totalorder %s1142_s27, 2  ;;  %s827_s23 = sand.u32 1, %s1130_s24  }
 0x34f   : > { %s828_s11 = scalar_lea.sflag [#allocation3], %s827_s23 }
 0x350   : > { %p1031_p4 = pnand %p1034_p3, %p1230_p6 }
 0x352   : > { %1125 = dma.done.wait (!%p1031_p4), %s828_s11, 128  }
 0x353   : > { %1127 = vsyncadd (!%p1031_p4), %s828_s11, 4294967168  ;;  %p17_p5 = scmp.ge.s32.totalorder %s1213_s30, 4   ;;  %s1433_s24 = smov %s1134_s25 }
 0x354   : > { %s1434_s25 = smov %s1138_s26  ;;  %s1435_s26 = smov %s1224_s10 }
 0x355   : > { %s1436_s27 = smov %s1213_s30  ;;  %19 = sbr.rel (!%p17_p5) target bundleno = 3 (0x3), region = 83 }
 0x35c   :  { %833 = vsyncpa [#allocation3], 1 }
 0x35d   :  { %835 = vsyncpa [#allocation3 + $0x1], 1 }

</bundles_post_ra>
